<compile_context>
chip_gen: v7x
topology: tpu7x:2x2x1
jax: 0.10.0
libtpu: 0.0.40
codegen_flags: <defaults>
</compile_context>

<pallas_src>
import functools

import jax
import jax.numpy as jnp
from jax.experimental import pallas as pl
from jax.experimental.pallas import tpu as pltpu


def encoder_lstm_kernel(x_ref, slab_ref, out_ref, *, S, E, H):
    """Full LSTM recurrence + code head for one sequence.

    x_ref    : (S, E)           input sequence (time-major, batch squeezed)
    slab_ref : (E + 2H + 2, 4H) fused constant slab, gate order [i, f, o, g]:
                 rows [0, E)          W_ih fused (sigmoid cols pre-scaled 0.5)
                 rows [E, E+H)        W_hh fused (sigmoid cols pre-scaled 0.5)
                 rows [E+H, E+2H)     W_code, zero-padded to 4H lanes
                 row   E+2H           b_ih + b_hh fused (sigmoid lanes * 0.5)
                 row   E+2H+1         b_code, zero-padded to 4H lanes
    out_ref  : (1, 4H)          lane-dense ReLU(code_layer(h_last)), first C
                                lanes valid.
    """
    G = 4 * H
    r_wih, r_whh, r_wcode = 0, E, E + H
    r_b, r_bcode = E + 2 * H, E + 2 * H + 1

    wih = slab_ref[r_wih:r_wih + E, :]           # (E, 4H)
    whh = slab_ref[r_whh:r_whh + H, :]           # (H, 4H)
    b = slab_ref[r_b:r_b + 1, :]                 # (1, 4H)

    # Input projection hoisted out of the recurrence: one (S,E)@(E,4H) matmul
    # with the bias folded in once.  Result (S, 4H) = (8, 128): one vreg.
    xproj = (jnp.dot(x_ref[...], wih, preferred_element_type=jnp.float32)
             + b)                                            # (S, 4H)

    h = jnp.zeros((1, H), jnp.float32)
    c = jnp.zeros((1, H), jnp.float32)

    # S is a static Python int -> fully unrolled recurrence, static slices.
    for t in range(S):
        z = xproj[t:t + 1, :] + jnp.dot(h, whh,
                                        preferred_element_type=jnp.float32)  # (1, 4H)

        # One EUP push per step: tanh over the whole gate vreg.  The sigmoid
        # gate columns were pre-scaled by 0.5, so sigmoid(z_true) = 0.5*t+0.5.
        tz = jnp.tanh(z)
        sig = 0.5 * tz[:, :3 * H] + 0.5          # [i, f, o] gates
        i_g = sig[:, :H]
        f_g = sig[:, H:2 * H]
        o_g = sig[:, 2 * H:3 * H]
        g_g = tz[:, 3 * H:]                      # cell candidate (tanh gate)

        c = f_g * c + i_g * g_g
        h = o_g * jnp.tanh(c)

    wcode = slab_ref[r_wcode:r_wcode + H, :]     # (H, 4H), zero-padded past C
    bcode = slab_ref[r_bcode:r_bcode + 1, :]     # (1, 4H), zero-padded past C
    code = jnp.dot(h, wcode, preferred_element_type=jnp.float32) + bcode
    out_ref[...] = jnp.maximum(code, 0.0)        # lane-dense (1, 4H) store


def prepare_encoder_params(params):
    """One-time weight preparation: gate fusion + permutation + sigmoid
    pre-scaling + lane padding, packed into a single lane-dense f32 slab.

    PyTorch gate order in W_ih / W_hh / biases is [i, f, g, o]; we permute to
    [i, f, o, g] so the three sigmoid gates are one contiguous 3H lane block,
    pre-scale those columns by 0.5 (sigmoid-via-tanh identity), and transpose
    so every in-kernel matmul is row-vector @ (in, out).
    """
    W_ih, W_hh = params["W_ih"], params["W_hh"]
    b_ih, b_hh = params["b_ih"], params["b_hh"]
    W_code, b_code = params["W_code"], params["b_code"]

    H = W_hh.shape[1]
    E = W_ih.shape[1]
    C = W_code.shape[0]
    G = 4 * H
    assert G == 128, "slab layout assumes 4*encoder_size == 128 lanes"
    assert E % 8 == 0 and H % 8 == 0, "slab segments must be 8-sublane aligned"
    assert C <= G

    def fuse_w(W):  # (4H, in) -> (in, 4H) with gate order [i, f, o, g]
        Wi, Wf, Wg, Wo = jnp.split(W, 4, axis=0)
        return jnp.concatenate([Wi, Wf, Wo, Wg], axis=0).T

    # 0.5 on sigmoid lanes ([i,f,o] = first 3H), 1.0 on the tanh gate lanes.
    gate_scale = jnp.concatenate(
        [jnp.full((3 * H,), 0.5, jnp.float32), jnp.ones((H,), jnp.float32)])

    wih_f = fuse_w(W_ih) * gate_scale            # (E, 4H)
    whh_f = fuse_w(W_hh) * gate_scale            # (H, 4H)

    b = b_ih + b_hh
    bi, bf, bg, bo = jnp.split(b, 4)
    b_f = jnp.concatenate([bi, bf, bo, bg]) * gate_scale    # (4H,)

    rows = E + 2 * H + 2
    slab = jnp.zeros((rows, G), jnp.float32)
    slab = slab.at[0:E, :].set(wih_f)
    slab = slab.at[E:E + H, :].set(whh_f)
    slab = slab.at[E + H:E + 2 * H, :C].set(W_code.T)       # lane-padded head
    slab = slab.at[E + 2 * H, :].set(b_f)
    slab = slab.at[E + 2 * H + 1, :C].set(b_code)
    return slab


def encoder_forward(X, slab, *, code_size):
    """X: (S, 1, E) float32 (PyTorch LSTM layout, batch=1). Returns (code_size,)."""
    S, B, E = X.shape
    assert B == 1, "module hard-codes batch size 1 via its initial hidden state"
    G = slab.shape[1]
    H = G // 4
    assert slab.shape[0] == E + 2 * H + 2

    x2 = X.reshape(S, E)                          # free reshape, no relayout

    kern = functools.partial(encoder_lstm_kernel, S=S, E=E, H=H)
    vmem = pl.BlockSpec(memory_space=pltpu.MemorySpace.VMEM)

    flops = 2 * S * E * G + 2 * S * H * G + 2 * H * G
    transcendentals = S * (G + H)                 # tanh(z) + tanh(c) per step
    bytes_accessed = 4 * (S * E + slab.size + G)

    out = pl.pallas_call(
        kern,
        out_shape=jax.ShapeDtypeStruct((1, G), jnp.float32),
        in_specs=[vmem, vmem],
        out_specs=vmem,
        cost_estimate=pl.CostEstimate(
            flops=flops,
            transcendentals=transcendentals,
            bytes_accessed=bytes_accessed),
    )(x2, slab)
    return out[0, :code_size]                     # (C,)


def encoder_reference(X, params):
    """Pure-JAX reference of the PyTorch forward, for validation."""
    W_ih, W_hh, b_ih, b_hh, W_code, b_code = (
        params["W_ih"], params["W_hh"], params["b_ih"],
        params["b_hh"], params["W_code"], params["b_code"])
    H = W_hh.shape[1]
    h = jnp.zeros((H,), jnp.float32)
    c = jnp.zeros((H,), jnp.float32)
    for t in range(X.shape[0]):
        x_t = X[t, 0, :]
        z = W_ih @ x_t + b_ih + W_hh @ h + b_hh
        i, f, g, o = z[:H], z[H:2 * H], z[2 * H:3 * H], z[3 * H:]
        i, f, o = jax.nn.sigmoid(i), jax.nn.sigmoid(f), jax.nn.sigmoid(o)
        g = jnp.tanh(g)
        c = f * c + i * g
        h = o * jnp.tanh(c)
    return jnp.maximum(W_code @ h + b_code, 0.0)


if __name__ == "__main__":
    # Small shapes consistent with the module: code_size=16, em_len=32, encoder_size=32.
    S, E, H, C = 8, 32, 32, 16

    key = jax.random.PRNGKey(0)
    ks = jax.random.split(key, 7)
    params = {
        "W_ih":   0.1 * jax.random.normal(ks[0], (4 * H, E), jnp.float32),
        "W_hh":   0.1 * jax.random.normal(ks[1], (4 * H, H), jnp.float32),
        "b_ih":   0.1 * jax.random.normal(ks[2], (4 * H,), jnp.float32),
        "b_hh":   0.1 * jax.random.normal(ks[3], (4 * H,), jnp.float32),
        "W_code": 0.1 * jax.random.normal(ks[4], (C, H), jnp.float32),
        "b_code": 0.1 * jax.random.normal(ks[5], (C,), jnp.float32),
    }
    X = jax.random.normal(ks[6], (S, 1, E), jnp.float32)   # (seq, batch=1, em_len)

    # All weight fusion / permutation / padding done once, outside the forward.
    slab = jax.block_until_ready(prepare_encoder_params(params))

    fwd = jax.jit(functools.partial(encoder_forward, code_size=C))
    code = jax.block_until_ready(fwd(X, slab))
    ref = encoder_reference(X, params)

    assert code.shape == (C,)
    assert jnp.allclose(code, ref, atol=1e-5, rtol=1e-5), (code, ref)
    print("KERNEL_OK")
</pallas_src>

<mosaic_0001>
module attributes {stable_mosaic.version = 11 : i64} {
  func.func @encoder_lstm_kernel(%arg0: memref<8x32xf32, #tpu.memory_space<vmem>>, %arg1: memref<98x128xf32, #tpu.memory_space<vmem>>, %arg2: memref<1x128xf32, #tpu.memory_space<vmem>>) attributes {dimension_semantics = [], scalar_prefetch = 0 : i64, scratch_operands = 0 : i64, tpu.core_type = #tpu.core_type<tc>} {
    %c0 = arith.constant 0 : index
    %c0_0 = arith.constant 0 : index
    %0 = vector.load %arg1[%c0, %c0_0] : memref<98x128xf32, #tpu.memory_space<vmem>>, vector<32x128xf32>
    %c32 = arith.constant 32 : index
    %c0_1 = arith.constant 0 : index
    %1 = vector.load %arg1[%c32, %c0_1] : memref<98x128xf32, #tpu.memory_space<vmem>>, vector<32x128xf32>
    %c96 = arith.constant 96 : index
    %c0_2 = arith.constant 0 : index
    %2 = vector.load %arg1[%c96, %c0_2] : memref<98x128xf32, #tpu.memory_space<vmem>>, vector<1x128xf32>
    %c0_3 = arith.constant 0 : index
    %c0_4 = arith.constant 0 : index
    %3 = vector.load %arg0[%c0_3, %c0_4] : memref<8x32xf32, #tpu.memory_space<vmem>>, vector<8x32xf32>
    %cst = arith.constant dense<0.000000e+00> : vector<8x128xf32>
    %4 = tpu.matmul %3, %0, %cst {dimension_numbers = #tpu.dot_dimension_numbers<[1], [0], [0], [1], [0, 0, 1, 1], [], []>} : vector<8x32xf32>, vector<32x128xf32>, vector<8x128xf32> -> vector<8x128xf32>
    %5 = vector.broadcast %2 : vector<1x128xf32> to vector<8x128xf32>
    %6 = arith.addf %4, %5 : vector<8x128xf32>
    %cst_5 = arith.constant 0.000000e+00 : f32
    %7 = vector.broadcast %cst_5 : f32 to vector<1x32xf32>
    %cst_6 = arith.constant 0.000000e+00 : f32
    %8 = vector.broadcast %cst_6 : f32 to vector<1x32xf32>
    %9 = vector.extract_strided_slice %6 {offsets = [0, 0], sizes = [1, 128], strides = [1, 1]} : vector<8x128xf32> to vector<1x128xf32>
    %cst_7 = arith.constant dense<0.000000e+00> : vector<1x128xf32>
    %10 = tpu.matmul %7, %1, %cst_7 {dimension_numbers = #tpu.dot_dimension_numbers<[1], [0], [0], [1], [0, 0, 1, 1], [], []>} : vector<1x32xf32>, vector<32x128xf32>, vector<1x128xf32> -> vector<1x128xf32>
    %11 = arith.addf %9, %10 : vector<1x128xf32>
    %12 = math.tanh %11 : vector<1x128xf32>
    %13 = vector.extract_strided_slice %12 {offsets = [0, 0], sizes = [1, 96], strides = [1, 1]} : vector<1x128xf32> to vector<1x96xf32>
    %cst_8 = arith.constant 5.000000e-01 : f32
    %14 = vector.broadcast %cst_8 : f32 to vector<1x96xf32>
    %15 = arith.mulf %14, %13 : vector<1x96xf32>
    %cst_9 = arith.constant 5.000000e-01 : f32
    %16 = vector.broadcast %cst_9 : f32 to vector<1x96xf32>
    %17 = arith.addf %15, %16 : vector<1x96xf32>
    %18 = vector.extract_strided_slice %17 {offsets = [0, 0], sizes = [1, 32], strides = [1, 1]} : vector<1x96xf32> to vector<1x32xf32>
    %19 = vector.extract_strided_slice %17 {offsets = [0, 32], sizes = [1, 32], strides = [1, 1]} : vector<1x96xf32> to vector<1x32xf32>
    %20 = vector.extract_strided_slice %17 {offsets = [0, 64], sizes = [1, 32], strides = [1, 1]} : vector<1x96xf32> to vector<1x32xf32>
    %21 = vector.extract_strided_slice %12 {offsets = [0, 96], sizes = [1, 32], strides = [1, 1]} : vector<1x128xf32> to vector<1x32xf32>
    %22 = arith.mulf %19, %8 : vector<1x32xf32>
    %23 = arith.mulf %18, %21 : vector<1x32xf32>
    %24 = arith.addf %22, %23 : vector<1x32xf32>
    %25 = math.tanh %24 : vector<1x32xf32>
    %26 = arith.mulf %20, %25 : vector<1x32xf32>
    %27 = vector.extract_strided_slice %6 {offsets = [1, 0], sizes = [1, 128], strides = [1, 1]} : vector<8x128xf32> to vector<1x128xf32>
    %cst_10 = arith.constant dense<0.000000e+00> : vector<1x128xf32>
    %28 = tpu.matmul %26, %1, %cst_10 {dimension_numbers = #tpu.dot_dimension_numbers<[1], [0], [0], [1], [0, 0, 1, 1], [], []>} : vector<1x32xf32>, vector<32x128xf32>, vector<1x128xf32> -> vector<1x128xf32>
    %29 = arith.addf %27, %28 : vector<1x128xf32>
    %30 = math.tanh %29 : vector<1x128xf32>
    %31 = vector.extract_strided_slice %30 {offsets = [0, 0], sizes = [1, 96], strides = [1, 1]} : vector<1x128xf32> to vector<1x96xf32>
    %cst_11 = arith.constant 5.000000e-01 : f32
    %32 = vector.broadcast %cst_11 : f32 to vector<1x96xf32>
    %33 = arith.mulf %32, %31 : vector<1x96xf32>
    %cst_12 = arith.constant 5.000000e-01 : f32
    %34 = vector.broadcast %cst_12 : f32 to vector<1x96xf32>
    %35 = arith.addf %33, %34 : vector<1x96xf32>
    %36 = vector.extract_strided_slice %35 {offsets = [0, 0], sizes = [1, 32], strides = [1, 1]} : vector<1x96xf32> to vector<1x32xf32>
    %37 = vector.extract_strided_slice %35 {offsets = [0, 32], sizes = [1, 32], strides = [1, 1]} : vector<1x96xf32> to vector<1x32xf32>
    %38 = vector.extract_strided_slice %35 {offsets = [0, 64], sizes = [1, 32], strides = [1, 1]} : vector<1x96xf32> to vector<1x32xf32>
    %39 = vector.extract_strided_slice %30 {offsets = [0, 96], sizes = [1, 32], strides = [1, 1]} : vector<1x128xf32> to vector<1x32xf32>
    %40 = arith.mulf %37, %24 : vector<1x32xf32>
    %41 = arith.mulf %36, %39 : vector<1x32xf32>
    %42 = arith.addf %40, %41 : vector<1x32xf32>
    %43 = math.tanh %42 : vector<1x32xf32>
    %44 = arith.mulf %38, %43 : vector<1x32xf32>
    %45 = vector.extract_strided_slice %6 {offsets = [2, 0], sizes = [1, 128], strides = [1, 1]} : vector<8x128xf32> to vector<1x128xf32>
    %cst_13 = arith.constant dense<0.000000e+00> : vector<1x128xf32>
    %46 = tpu.matmul %44, %1, %cst_13 {dimension_numbers = #tpu.dot_dimension_numbers<[1], [0], [0], [1], [0, 0, 1, 1], [], []>} : vector<1x32xf32>, vector<32x128xf32>, vector<1x128xf32> -> vector<1x128xf32>
    %47 = arith.addf %45, %46 : vector<1x128xf32>
    %48 = math.tanh %47 : vector<1x128xf32>
    %49 = vector.extract_strided_slice %48 {offsets = [0, 0], sizes = [1, 96], strides = [1, 1]} : vector<1x128xf32> to vector<1x96xf32>
    %cst_14 = arith.constant 5.000000e-01 : f32
    %50 = vector.broadcast %cst_14 : f32 to vector<1x96xf32>
    %51 = arith.mulf %50, %49 : vector<1x96xf32>
    %cst_15 = arith.constant 5.000000e-01 : f32
    %52 = vector.broadcast %cst_15 : f32 to vector<1x96xf32>
    %53 = arith.addf %51, %52 : vector<1x96xf32>
    %54 = vector.extract_strided_slice %53 {offsets = [0, 0], sizes = [1, 32], strides = [1, 1]} : vector<1x96xf32> to vector<1x32xf32>
    %55 = vector.extract_strided_slice %53 {offsets = [0, 32], sizes = [1, 32], strides = [1, 1]} : vector<1x96xf32> to vector<1x32xf32>
    %56 = vector.extract_strided_slice %53 {offsets = [0, 64], sizes = [1, 32], strides = [1, 1]} : vector<1x96xf32> to vector<1x32xf32>
    %57 = vector.extract_strided_slice %48 {offsets = [0, 96], sizes = [1, 32], strides = [1, 1]} : vector<1x128xf32> to vector<1x32xf32>
    %58 = arith.mulf %55, %42 : vector<1x32xf32>
    %59 = arith.mulf %54, %57 : vector<1x32xf32>
    %60 = arith.addf %58, %59 : vector<1x32xf32>
    %61 = math.tanh %60 : vector<1x32xf32>
    %62 = arith.mulf %56, %61 : vector<1x32xf32>
    %63 = vector.extract_strided_slice %6 {offsets = [3, 0], sizes = [1, 128], strides = [1, 1]} : vector<8x128xf32> to vector<1x128xf32>
    %cst_16 = arith.constant dense<0.000000e+00> : vector<1x128xf32>
    %64 = tpu.matmul %62, %1, %cst_16 {dimension_numbers = #tpu.dot_dimension_numbers<[1], [0], [0], [1], [0, 0, 1, 1], [], []>} : vector<1x32xf32>, vector<32x128xf32>, vector<1x128xf32> -> vector<1x128xf32>
    %65 = arith.addf %63, %64 : vector<1x128xf32>
    %66 = math.tanh %65 : vector<1x128xf32>
    %67 = vector.extract_strided_slice %66 {offsets = [0, 0], sizes = [1, 96], strides = [1, 1]} : vector<1x128xf32> to vector<1x96xf32>
    %cst_17 = arith.constant 5.000000e-01 : f32
    %68 = vector.broadcast %cst_17 : f32 to vector<1x96xf32>
    %69 = arith.mulf %68, %67 : vector<1x96xf32>
    %cst_18 = arith.constant 5.000000e-01 : f32
    %70 = vector.broadcast %cst_18 : f32 to vector<1x96xf32>
    %71 = arith.addf %69, %70 : vector<1x96xf32>
    %72 = vector.extract_strided_slice %71 {offsets = [0, 0], sizes = [1, 32], strides = [1, 1]} : vector<1x96xf32> to vector<1x32xf32>
    %73 = vector.extract_strided_slice %71 {offsets = [0, 32], sizes = [1, 32], strides = [1, 1]} : vector<1x96xf32> to vector<1x32xf32>
    %74 = vector.extract_strided_slice %71 {offsets = [0, 64], sizes = [1, 32], strides = [1, 1]} : vector<1x96xf32> to vector<1x32xf32>
    %75 = vector.extract_strided_slice %66 {offsets = [0, 96], sizes = [1, 32], strides = [1, 1]} : vector<1x128xf32> to vector<1x32xf32>
    %76 = arith.mulf %73, %60 : vector<1x32xf32>
    %77 = arith.mulf %72, %75 : vector<1x32xf32>
    %78 = arith.addf %76, %77 : vector<1x32xf32>
    %79 = math.tanh %78 : vector<1x32xf32>
    %80 = arith.mulf %74, %79 : vector<1x32xf32>
    %81 = vector.extract_strided_slice %6 {offsets = [4, 0], sizes = [1, 128], strides = [1, 1]} : vector<8x128xf32> to vector<1x128xf32>
    %cst_19 = arith.constant dense<0.000000e+00> : vector<1x128xf32>
    %82 = tpu.matmul %80, %1, %cst_19 {dimension_numbers = #tpu.dot_dimension_numbers<[1], [0], [0], [1], [0, 0, 1, 1], [], []>} : vector<1x32xf32>, vector<32x128xf32>, vector<1x128xf32> -> vector<1x128xf32>
    %83 = arith.addf %81, %82 : vector<1x128xf32>
    %84 = math.tanh %83 : vector<1x128xf32>
    %85 = vector.extract_strided_slice %84 {offsets = [0, 0], sizes = [1, 96], strides = [1, 1]} : vector<1x128xf32> to vector<1x96xf32>
    %cst_20 = arith.constant 5.000000e-01 : f32
    %86 = vector.broadcast %cst_20 : f32 to vector<1x96xf32>
    %87 = arith.mulf %86, %85 : vector<1x96xf32>
    %cst_21 = arith.constant 5.000000e-01 : f32
    %88 = vector.broadcast %cst_21 : f32 to vector<1x96xf32>
    %89 = arith.addf %87, %88 : vector<1x96xf32>
    %90 = vector.extract_strided_slice %89 {offsets = [0, 0], sizes = [1, 32], strides = [1, 1]} : vector<1x96xf32> to vector<1x32xf32>
    %91 = vector.extract_strided_slice %89 {offsets = [0, 32], sizes = [1, 32], strides = [1, 1]} : vector<1x96xf32> to vector<1x32xf32>
    %92 = vector.extract_strided_slice %89 {offsets = [0, 64], sizes = [1, 32], strides = [1, 1]} : vector<1x96xf32> to vector<1x32xf32>
    %93 = vector.extract_strided_slice %84 {offsets = [0, 96], sizes = [1, 32], strides = [1, 1]} : vector<1x128xf32> to vector<1x32xf32>
    %94 = arith.mulf %91, %78 : vector<1x32xf32>
    %95 = arith.mulf %90, %93 : vector<1x32xf32>
    %96 = arith.addf %94, %95 : vector<1x32xf32>
    %97 = math.tanh %96 : vector<1x32xf32>
    %98 = arith.mulf %92, %97 : vector<1x32xf32>
    %99 = vector.extract_strided_slice %6 {offsets = [5, 0], sizes = [1, 128], strides = [1, 1]} : vector<8x128xf32> to vector<1x128xf32>
    %cst_22 = arith.constant dense<0.000000e+00> : vector<1x128xf32>
    %100 = tpu.matmul %98, %1, %cst_22 {dimension_numbers = #tpu.dot_dimension_numbers<[1], [0], [0], [1], [0, 0, 1, 1], [], []>} : vector<1x32xf32>, vector<32x128xf32>, vector<1x128xf32> -> vector<1x128xf32>
    %101 = arith.addf %99, %100 : vector<1x128xf32>
    %102 = math.tanh %101 : vector<1x128xf32>
    %103 = vector.extract_strided_slice %102 {offsets = [0, 0], sizes = [1, 96], strides = [1, 1]} : vector<1x128xf32> to vector<1x96xf32>
    %cst_23 = arith.constant 5.000000e-01 : f32
    %104 = vector.broadcast %cst_23 : f32 to vector<1x96xf32>
    %105 = arith.mulf %104, %103 : vector<1x96xf32>
    %cst_24 = arith.constant 5.000000e-01 : f32
    %106 = vector.broadcast %cst_24 : f32 to vector<1x96xf32>
    %107 = arith.addf %105, %106 : vector<1x96xf32>
    %108 = vector.extract_strided_slice %107 {offsets = [0, 0], sizes = [1, 32], strides = [1, 1]} : vector<1x96xf32> to vector<1x32xf32>
    %109 = vector.extract_strided_slice %107 {offsets = [0, 32], sizes = [1, 32], strides = [1, 1]} : vector<1x96xf32> to vector<1x32xf32>
    %110 = vector.extract_strided_slice %107 {offsets = [0, 64], sizes = [1, 32], strides = [1, 1]} : vector<1x96xf32> to vector<1x32xf32>
    %111 = vector.extract_strided_slice %102 {offsets = [0, 96], sizes = [1, 32], strides = [1, 1]} : vector<1x128xf32> to vector<1x32xf32>
    %112 = arith.mulf %109, %96 : vector<1x32xf32>
    %113 = arith.mulf %108, %111 : vector<1x32xf32>
    %114 = arith.addf %112, %113 : vector<1x32xf32>
    %115 = math.tanh %114 : vector<1x32xf32>
    %116 = arith.mulf %110, %115 : vector<1x32xf32>
    %117 = vector.extract_strided_slice %6 {offsets = [6, 0], sizes = [1, 128], strides = [1, 1]} : vector<8x128xf32> to vector<1x128xf32>
    %cst_25 = arith.constant dense<0.000000e+00> : vector<1x128xf32>
    %118 = tpu.matmul %116, %1, %cst_25 {dimension_numbers = #tpu.dot_dimension_numbers<[1], [0], [0], [1], [0, 0, 1, 1], [], []>} : vector<1x32xf32>, vector<32x128xf32>, vector<1x128xf32> -> vector<1x128xf32>
    %119 = arith.addf %117, %118 : vector<1x128xf32>
    %120 = math.tanh %119 : vector<1x128xf32>
    %121 = vector.extract_strided_slice %120 {offsets = [0, 0], sizes = [1, 96], strides = [1, 1]} : vector<1x128xf32> to vector<1x96xf32>
    %cst_26 = arith.constant 5.000000e-01 : f32
    %122 = vector.broadcast %cst_26 : f32 to vector<1x96xf32>
    %123 = arith.mulf %122, %121 : vector<1x96xf32>
    %cst_27 = arith.constant 5.000000e-01 : f32
    %124 = vector.broadcast %cst_27 : f32 to vector<1x96xf32>
    %125 = arith.addf %123, %124 : vector<1x96xf32>
    %126 = vector.extract_strided_slice %125 {offsets = [0, 0], sizes = [1, 32], strides = [1, 1]} : vector<1x96xf32> to vector<1x32xf32>
    %127 = vector.extract_strided_slice %125 {offsets = [0, 32], sizes = [1, 32], strides = [1, 1]} : vector<1x96xf32> to vector<1x32xf32>
    %128 = vector.extract_strided_slice %125 {offsets = [0, 64], sizes = [1, 32], strides = [1, 1]} : vector<1x96xf32> to vector<1x32xf32>
    %129 = vector.extract_strided_slice %120 {offsets = [0, 96], sizes = [1, 32], strides = [1, 1]} : vector<1x128xf32> to vector<1x32xf32>
    %130 = arith.mulf %127, %114 : vector<1x32xf32>
    %131 = arith.mulf %126, %129 : vector<1x32xf32>
    %132 = arith.addf %130, %131 : vector<1x32xf32>
    %133 = math.tanh %132 : vector<1x32xf32>
    %134 = arith.mulf %128, %133 : vector<1x32xf32>
    %135 = vector.extract_strided_slice %6 {offsets = [7, 0], sizes = [1, 128], strides = [1, 1]} : vector<8x128xf32> to vector<1x128xf32>
    %cst_28 = arith.constant dense<0.000000e+00> : vector<1x128xf32>
    %136 = tpu.matmul %134, %1, %cst_28 {dimension_numbers = #tpu.dot_dimension_numbers<[1], [0], [0], [1], [0, 0, 1, 1], [], []>} : vector<1x32xf32>, vector<32x128xf32>, vector<1x128xf32> -> vector<1x128xf32>
    %137 = arith.addf %135, %136 : vector<1x128xf32>
    %138 = math.tanh %137 : vector<1x128xf32>
    %139 = vector.extract_strided_slice %138 {offsets = [0, 0], sizes = [1, 96], strides = [1, 1]} : vector<1x128xf32> to vector<1x96xf32>
    %cst_29 = arith.constant 5.000000e-01 : f32
    %140 = vector.broadcast %cst_29 : f32 to vector<1x96xf32>
    %141 = arith.mulf %140, %139 : vector<1x96xf32>
    %cst_30 = arith.constant 5.000000e-01 : f32
    %142 = vector.broadcast %cst_30 : f32 to vector<1x96xf32>
    %143 = arith.addf %141, %142 : vector<1x96xf32>
    %144 = vector.extract_strided_slice %143 {offsets = [0, 0], sizes = [1, 32], strides = [1, 1]} : vector<1x96xf32> to vector<1x32xf32>
    %145 = vector.extract_strided_slice %143 {offsets = [0, 32], sizes = [1, 32], strides = [1, 1]} : vector<1x96xf32> to vector<1x32xf32>
    %146 = vector.extract_strided_slice %143 {offsets = [0, 64], sizes = [1, 32], strides = [1, 1]} : vector<1x96xf32> to vector<1x32xf32>
    %147 = vector.extract_strided_slice %138 {offsets = [0, 96], sizes = [1, 32], strides = [1, 1]} : vector<1x128xf32> to vector<1x32xf32>
    %148 = arith.mulf %145, %132 : vector<1x32xf32>
    %149 = arith.mulf %144, %147 : vector<1x32xf32>
    %150 = arith.addf %148, %149 : vector<1x32xf32>
    %151 = math.tanh %150 : vector<1x32xf32>
    %152 = arith.mulf %146, %151 : vector<1x32xf32>
    %c64 = arith.constant 64 : index
    %c0_31 = arith.constant 0 : index
    %153 = vector.load %arg1[%c64, %c0_31] : memref<98x128xf32, #tpu.memory_space<vmem>>, vector<32x128xf32>
    %c97 = arith.constant 97 : index
    %c0_32 = arith.constant 0 : index
    %154 = vector.load %arg1[%c97, %c0_32] : memref<98x128xf32, #tpu.memory_space<vmem>>, vector<1x128xf32>
    %cst_33 = arith.constant dense<0.000000e+00> : vector<1x128xf32>
    %155 = tpu.matmul %152, %153, %cst_33 {dimension_numbers = #tpu.dot_dimension_numbers<[1], [0], [0], [1], [0, 0, 1, 1], [], []>} : vector<1x32xf32>, vector<32x128xf32>, vector<1x128xf32> -> vector<1x128xf32>
    %156 = arith.addf %155, %154 : vector<1x128xf32>
    %cst_34 = arith.constant 0.000000e+00 : f32
    %157 = vector.broadcast %cst_34 : f32 to vector<1x128xf32>
    %158 = arith.maximumf %156, %157 : vector<1x128xf32>
    %c0_35 = arith.constant 0 : index
    %c0_36 = arith.constant 0 : index
    %159 = vector.load %arg2[%c0_35, %c0_36] : memref<1x128xf32, #tpu.memory_space<vmem>>, vector<1x128xf32>
    tpu.vector_store %arg2[%c0_35, %c0_36], %158 {strides = array<i32>} : memref<1x128xf32, #tpu.memory_space<vmem>>, vector<1x128xf32>,
    return
  }
}

</mosaic_0001>

<bundles_post_ra>
// kernel: encoder_forward.1
= control target key start
LH: loop header
LB: loop body
LE: loop exit
PB: predicated region body
PF: predicated region fallthrough
CT: control target
= control target key end

     0   :  { %7 = vsyncpa [#allocation3], 0  ;;  %s1517_s0 = inlined_call_operand.hbm [shape: f32[8,32], index: 0, kind: input, shape index: {}]   ;;  %s1518_s1 = inlined_call_operand.hbm [shape: f32[98,128], index: 1, kind: input, shape index: {}]   ;;  %s1519_s2 = inlined_call_operand.vmem [shape: f32[1,128], index: 2, kind: output, shape index: {}]  }
   0x1   :  { %8 = vsyncpa [#allocation5], 0  ;;  %s1347_s9 = smov [#allocation2]   ;;  %s1348_s11 = smov [#allocation4]  }
   0x2   :  { %s15_s10 = sshll.u32 %s1347_s9, 4  ;;  %s24_s12 = sshll.u32 %s1348_s11, 4  ;;  %s16_s10 = int_to_ptr.vmem [resolvable:$true] %s15_s10  ;;  %s1371_s12 = int_to_ptr.vmem [resolvable:$true] %s24_s12 }
   0x3   :  { %s1299_s15 = scalar_lea.hbm %s1517_s0, 128 }
   0x4   :  { %p1300_p0 = scmp.ne.s32.totalorder %s1517_s0, %s1299_s15  ;;  %p1303_p1 = scmp.lt.u32.totalorder %s1299_s15, %s1517_s0 }
   0x6   :  { %p1305_p2 = pnand %p1303_p1, %p1300_p0 }
   0x8   :  { %1308 = shalt.err (!%p1305_p2)
}
   0x9   :  { %s1309_s20 = scalar_lea.vmem %s16_s10, 128  ;;  %p1314_p4 = scmp.lt.s32.totalorder %s16_s10, %s16_s10 }
   0xa   :  { %p1310_p3 = scmp.ne.s32.totalorder %s16_s10, %s1309_s20  ;;  %p1315_p5 = scmp.lt.s32.totalorder %s1309_s20, %s1309_s20 }
   0xc   :  { %p1316_p6 = por %p1315_p5, %p1314_p4 }
   0xe   :  { %p1317_p7 = pnand %p1316_p6, %p1310_p3 }
  0x10   :  { %1320 = shalt.err (!%p1317_p7)
}
  0x11   :  { %18 = dma.hbm_to_vmem [thread:$0]  %s1517_s0, 128, %s16_s10, [#allocation3]  }
  0x12   :  { %s1321_s25 = scalar_lea.hbm %s1518_s1, 1664 }
  0x13   :  { %p1322_p8 = scmp.ne.s32.totalorder %s1518_s1, %s1321_s25  ;;  %p1325_p9 = scmp.lt.u32.totalorder %s1321_s25, %s1518_s1 }
  0x15   :  { %p1327_p10 = pnand %p1325_p9, %p1322_p8 }
  0x17   :  { %1330 = shalt.err (!%p1327_p10)
}
  0x18   :  { %s1331_s30 = scalar_lea.vmem %s1371_s12, 1664  ;;  %p1336_p12 = scmp.lt.s32.totalorder %s1371_s12, %s1371_s12 }
  0x19   :  { %p1332_p11 = scmp.ne.s32.totalorder %s1371_s12, %s1331_s30  ;;  %p1337_p13 = scmp.lt.s32.totalorder %s1331_s30, %s1331_s30 }
  0x1b   :  { %p1338_p0 = por %p1337_p13, %p1336_p12 }
  0x1d   :  { %p1339_p1 = pnand %p1338_p0, %p1332_p11 }
  0x1f   :  { %1342 = shalt.err (!%p1339_p1)
}
  0x20   :  { %s1349_s0 = smov 128   ;;  %s1350_s3 = smov 8  }
  0x21   :  { %30 = dma.hbm_to_vmem [thread:$0]  %s1518_s1, 1664, %s1371_s12, [#allocation5], %s1349_s0, %s1349_s0, %s1350_s3  }
  0x22   :  { %1343 = dma.done.wait [#allocation3], 128  }
  0x23   :  { %1344 = vsyncadd [#allocation3], 4294967168 }
  0x24   :  { %1345 = dma.done.wait [#allocation5], 1664  }
  0x25   :  { %1346 = vsyncadd [#allocation5], 4294965632  ;;  %v1351_v0 = vmov 0.0|0.0   ;;  %vm1352_vm0 = vmmov 0   ;;  %v1353_v1 = vmov 0.0   ;;  %v37_v2 = vld [vmem:[#allocation4] sm:$0xff] }
  0x26   :  { %1198 = vmatprep.subr.bf16.mxu0 %v1351_v0  ;;  %1204 = vmatprep.subr.bf16.mxu1 %v1351_v0  ;;  %v38_v3 = vld [vmem:[#allocation4 + $0x8] sm:$0xff]  ;;  %v41_v4 = vld [vmem:[#allocation4 + $0x20] sm:$0xff]  ;;  %v39_v7 = vld [vmem:[#allocation4 + $0x10] sm:$0xff]  ;;  %vm51_vm1 = vcmask 261120   ;;  %s1354_s1 = smov 32   ;;  %s1355_s6 = smov 64  }
  0x27   :  { %1096 = vmatprep.mubr.msk.f32.mxu0 %vm1352_vm0, %v1353_v1  ;;  %1107 = vmatprep.mubr.msk.f32.mxu1 %vm1352_vm0, %v1353_v1  ;;  %v1199_v5 = vpack.c.bf16 %v38_v3, %v37_v2  ;;  %v42_v6 = vld [vmem:[#allocation4 + $0x28] sm:$0xff]  ;;  %v40_v8 = vld [vmem:[#allocation4 + $0x18] sm:$0xff]  ;;  %v43_v10 = vld [vmem:[#allocation4 + $0x30] sm:$0xff] }
  0x28   :  { %v1408_v9 = vpack.c.bf16 %v42_v6, %v41_v4  ;;  %v44_v11 = vld [vmem:[#allocation4 + $0x38] sm:$0xff]  ;;  %v1202_v12 = vpack.c.bf16 %v40_v8, %v39_v7  ;;  %v1028_v15 = vld [vmem:[#allocation4 + $0x60] ss:$0 sm:$0xff] }
  0x29   :  { %1200 = vmatpush3.bf16.msra.mxu0 %v1199_v5  ;;  %v1412_v13 = vpack.c.bf16 %v44_v11, %v43_v10  ;;  %v46_v14 = vld [vmem:[#allocation2] sm:$0xff] }
  0x2a   :  { %1206 = vmatpush3.bf16.msra.mxu1 %v1408_v9  ;;  %1201 = vmatprep.subr.bf16.mxu0 %v1351_v0 }
  0x2b   :  { %1207 = vmatprep.subr.bf16.mxu1 %v1351_v0 }
  0x2d   :  { %1203 = vmatpush3.bf16.msra.mxu0 %v1202_v12 }
  0x2e   :  { %1209 = vmatpush3.bf16.msra.mxu1 %v1412_v13  ;;  %1210 = vmatprep.subr.bf16.mxu0 %v1351_v0 }
  0x2f   :  { %1216 = vmatprep.subr.bf16.mxu1 %v1351_v0 }
  0x30   :  { %1097 = vmatmul.mubr.msk.f32.vlgmr.msra.gmra.mrb[0].mxu0 %vm51_vm1, %v46_v14 }
  0x31   :  { %1108 = vmatmul.mubr.f32.vlgmr.msra.gmra.mrb[0].mxu1 %v1353_v1  ;;  %1212 = vmatpush3.bf16.msra.mxu0 %v1408_v9 }
  0x32   :  { %1213 = vmatprep.subr.bf16.mxu0 %v1351_v0  ;;  %1118 = vmatprep.mubr.msk.f32.mxu0 %vm1352_vm0, %v1353_v1 }
  0x33   :  { %1218 = vmatpush3.bf16.msra.mxu1 %v1408_v9  ;;  %1129 = vmatprep.mubr.msk.f32.mxu1 %vm1352_vm0, %v1353_v1 }
  0x34   :  { %1219 = vmatprep.subr.bf16.mxu1 %v1351_v0 }
  0x35   :  { %1215 = vmatpush3.bf16.msra.mxu0 %v1412_v13 }
  0x36   :  { %1222 = vmatprep.subr.bf16.mxu0 %v1351_v0 }
  0x37   :  { %1221 = vmatpush3.bf16.msra.mxu1 %v1412_v13 }
  0x38   :  { %1228 = vmatprep.subr.bf16.mxu1 %v1351_v0 }
 0x103   :  { %v121_v16 = vpop.f32.mrb[0].mxu0 }
 0x104   :  { %v1432_v17 = vadd.f32 %v1028_v15, %v121_v16  ;;  %v1098_v18 = vpop.f32.mrb[1].mxu0  ;;  %v194_v19 = vpop.f32.mrb[0].mxu1 }
 0x105   :  { %v1109_v20 = vpop.f32.mrb[1].mxu1 }
 0x106   :  { %v198_v21 = vadd.f32 %v194_v19, %v1432_v17 }
 0x108   :  { %1267 = vtanh.f32 %v198_v21 }
 0x112   :  { %v1268_v22 = vpop.eup %1267 }
 0x113   :  { %204 = vrot.lane.b32.xlu0 %v1268_v22, %s1354_s1  ;;  %v200_v23 = vmul.f32 0.5, %v1268_v22 }
 0x115   :  { %v201_v24 = vadd.f32 0.5, %v200_v23 }
 0x117   :  { %v202_v27 = vmul.f32 0.0, %v201_v24 }
 0x185   :  { %v205_v25 = vpop.permute.xlu0 %204 }
 0x186   :  { %v207_v26 = vmul.f32 %v205_v25, %v201_v24 }
 0x188   :  { %209 = vrot.lane.b32.xlu0 %v207_v26, %s1354_s1 }
 0x1fa   :  { %v210_v28 = vpop.permute.xlu0 %209 }
 0x1fb   :  { %v212_v29 = vadd.f32 %v210_v28, %v202_v27 }
 0x1fd   :  { %1269 = vtanh.f32 %v212_v29  ;;  %v302_v43 = vrot.slane %v212_v29, 7 }
 0x207   :  { %v1270_v30 = vpop.eup %1269 }
 0x208   :  { %215 = vrot.lane.b32.xlu1 %v1270_v30, %s1354_s1 }
 0x27a   :  { %v216_v31 = vpop.permute.xlu1 %215 }
 0x27b   :  { %v218_v32 = vmul.f32 %v216_v31, %v201_v24 }
 0x27d   :  { %220 = vrot.lane.b32.xlu1 %v218_v32, %s1355_s6 }
 0x2ef   :  { %v221_v33 = vpop.permute.xlu1 %220 }
 0x2f0   :  { %1119 = vmatmul.mubr.msk.f32.vlgmr.msra.gmra.mrb[2].mxu0 %vm51_vm1, %v221_v33 }
 0x2f1   :  { %1224 = vmatpush3.bf16.msra.mxu0 %v1408_v9  ;;  %1140 = vmatprep.mubr.msk.f32.mxu0 %vm1352_vm0, %v1353_v1 }
 0x2f2   :  { %1225 = vmatprep.subr.bf16.mxu0 %v1351_v0 }
 0x2f5   :  { %1227 = vmatpush3.bf16.msra.mxu0 %v1412_v13 }
 0x2f6   :  { %1234 = vmatprep.subr.bf16.mxu0 %v1351_v0 }
 0x3c3   :  { %v290_v34 = vpop.f32.mrb[2].mxu0 }
 0x3c4   :  { %v295_v35 = vrot.slane %v290_v34, 7  ;;  %v1120_v36 = vpop.f32.mrb[3].mxu0 }
 0x3c6   :  { %v297_v37 = vadd.f32 %v295_v35, %v1432_v17 }
 0x3c8   :  { %1271 = vtanh.f32 %v297_v37 }
 0x3d2   :  { %v1272_v38 = vpop.eup %1271 }
 0x3d3   :  { %306 = vrot.lane.b32.xlu0 %v1272_v38, %s1354_s1  ;;  %v299_v39 = vmul.f32 0.5, %v1272_v38 }
 0x3d5   :  { %v300_v40 = vadd.f32 0.5, %v299_v39 }
 0x3d7   :  { %v304_v44 = vmul.f32 %v302_v43, %v300_v40 }
 0x445   :  { %v307_v41 = vpop.permute.xlu0 %306 }
 0x446   :  { %v309_v42 = vmul.f32 %v307_v41, %v300_v40 }
 0x448   :  { %311 = vrot.lane.b32.xlu1 %v309_v42, %s1354_s1 }
 0x4ba   :  { %v312_v45 = vpop.permute.xlu1 %311 }
 0x4bb   :  { %v314_v46 = vadd.f32 %v312_v45, %v304_v44 }
 0x4bd   :  { %1273 = vtanh.f32 %v314_v46  ;;  %v405_v61 = vrot.slane %v314_v46, 7 }
 0x4c7   :  { %v1274_v47 = vpop.eup %1273 }
 0x4c8   :  { %317 = vrot.lane.b32.xlu0 %v1274_v47, %s1354_s1 }
 0x53a   :  { %v318_v48 = vpop.permute.xlu0 %317 }
 0x53b   :  { %v320_v49 = vmul.f32 %v318_v48, %v300_v40 }
 0x53d   :  { %v322_v50 = vrot.slane %v320_v49, 1 }
 0x53f   :  { %323 = vrot.lane.b32.xlu1 %v322_v50, %s1355_s6 }
 0x5b1   :  { %v324_v51 = vpop.permute.xlu1 %323 }
 0x5b2   :  { %1130 = vmatmul.mubr.msk.f32.vlgmr.msra.gmra.mrb[2].mxu1 %vm51_vm1, %v324_v51 }
 0x5b3   :  { %1230 = vmatpush3.bf16.msra.mxu1 %v1408_v9  ;;  %1151 = vmatprep.mubr.msk.f32.mxu1 %vm1352_vm0, %v1353_v1 }
 0x5b4   :  { %1231 = vmatprep.subr.bf16.mxu1 %v1351_v0 }
 0x5b7   :  { %1233 = vmatpush3.bf16.msra.mxu1 %v1412_v13 }
 0x5b8   :  { %1240 = vmatprep.subr.bf16.mxu1 %v1351_v0 }
 0x685   :  { %v393_v52 = vpop.f32.mrb[2].mxu1 }
 0x686   :  { %v398_v53 = vrot.slane %v393_v52, 6  ;;  %v1131_v54 = vpop.f32.mrb[3].mxu1 }
 0x688   :  { %v400_v55 = vadd.f32 %v398_v53, %v1432_v17 }
 0x68a   :  { %1275 = vtanh.f32 %v400_v55 }
 0x694   :  { %v1276_v56 = vpop.eup %1275 }
 0x695   :  { %409 = vrot.lane.b32.xlu0 %v1276_v56, %s1354_s1  ;;  %v402_v57 = vmul.f32 0.5, %v1276_v56 }
 0x697   :  { %v403_v58 = vadd.f32 0.5, %v402_v57 }
 0x699   :  { %v407_v62 = vmul.f32 %v405_v61, %v403_v58 }
 0x707   :  { %v410_v59 = vpop.permute.xlu0 %409 }
 0x708   :  { %v412_v60 = vmul.f32 %v410_v59, %v403_v58 }
 0x70a   :  { %414 = vrot.lane.b32.xlu1 %v412_v60, %s1354_s1 }
 0x77c   :  { %v415_v63 = vpop.permute.xlu1 %414 }
 0x77d   :  { %v417_v2 = vadd.f32 %v415_v63, %v407_v62 }
 0x77f   :  { %1277 = vtanh.f32 %v417_v2  ;;  %v508_v20 = vrot.slane %v417_v2, 7 }
 0x789   :  { %v1278_v3 = vpop.eup %1277 }
 0x78a   :  { %420 = vrot.lane.b32.xlu0 %v1278_v3, %s1354_s1 }
 0x7fc   :  { %v421_v4 = vpop.permute.xlu0 %420 }
 0x7fd   :  { %v423_v5 = vmul.f32 %v421_v4, %v403_v58 }
 0x7ff   :  { %v425_v6 = vrot.slane %v423_v5, 2 }
 0x801   :  { %426 = vrot.lane.b32.xlu1 %v425_v6, %s1355_s6 }
 0x873   :  { %v427_v7 = vpop.permute.xlu1 %426 }
 0x874   :  { %1141 = vmatmul.mubr.msk.f32.vlgmr.msra.gmra.mrb[4].mxu0 %vm51_vm1, %v427_v7 }
 0x875   :  { %1236 = vmatpush3.bf16.msra.mxu0 %v1408_v9  ;;  %1162 = vmatprep.mubr.msk.f32.mxu0 %vm1352_vm0, %v1353_v1 }
 0x876   :  { %1237 = vmatprep.subr.bf16.mxu0 %v1351_v0 }
 0x879   :  { %1239 = vmatpush3.bf16.msra.mxu0 %v1412_v13 }
 0x87a   :  { %1246 = vmatprep.subr.bf16.mxu0 %v1351_v0 }
 0x947   :  { %v496_v8 = vpop.f32.mrb[4].mxu0 }
 0x948   :  { %v501_v10 = vrot.slane %v496_v8, 5  ;;  %v1142_v11 = vpop.f32.mrb[5].mxu0 }
 0x94a   :  { %v503_v12 = vadd.f32 %v501_v10, %v1432_v17 }
 0x94c   :  { %1279 = vtanh.f32 %v503_v12 }
 0x956   :  { %v1280_v14 = vpop.eup %1279 }
 0x957   :  { %512 = vrot.lane.b32.xlu0 %v1280_v14, %s1354_s1  ;;  %v505_v15 = vmul.f32 0.5, %v1280_v14 }
 0x959   :  { %v506_v16 = vadd.f32 0.5, %v505_v15 }
 0x95b   :  { %v510_v21 = vmul.f32 %v508_v20, %v506_v16 }
 0x9c9   :  { %v513_v18 = vpop.permute.xlu0 %512 }
 0x9ca   :  { %v515_v19 = vmul.f32 %v513_v18, %v506_v16 }
 0x9cc   :  { %517 = vrot.lane.b32.xlu1 %v515_v19, %s1354_s1 }
 0xa3e   :  { %v518_v22 = vpop.permute.xlu1 %517 }
 0xa3f   :  { %v520_v23 = vadd.f32 %v518_v22, %v510_v21 }
 0xa41   :  { %1281 = vtanh.f32 %v520_v23  ;;  %v611_v38 = vrot.slane %v520_v23, 7 }
 0xa4b   :  { %v1282_v24 = vpop.eup %1281 }
 0xa4c   :  { %523 = vrot.lane.b32.xlu0 %v1282_v24, %s1354_s1 }
 0xabe   :  { %v524_v25 = vpop.permute.xlu0 %523 }
 0xabf   :  { %v526_v26 = vmul.f32 %v524_v25, %v506_v16 }
 0xac1   :  { %v528_v27 = vrot.slane %v526_v26, 3 }
 0xac3   :  { %529 = vrot.lane.b32.xlu1 %v528_v27, %s1355_s6 }
 0xb35   :  { %v530_v28 = vpop.permute.xlu1 %529 }
 0xb36   :  { %1152 = vmatmul.mubr.msk.f32.vlgmr.msra.gmra.mrb[4].mxu1 %vm51_vm1, %v530_v28 }
 0xb37   :  { %1242 = vmatpush3.bf16.msra.mxu1 %v1408_v9  ;;  %1173 = vmatprep.mubr.msk.f32.mxu1 %vm1352_vm0, %v1353_v1 }
 0xb38   :  { %1243 = vmatprep.subr.bf16.mxu1 %v1351_v0 }
 0xb3b   :  { %1245 = vmatpush3.bf16.msra.mxu1 %v1412_v13 }
 0xb3c   :  { %1252 = vmatprep.subr.bf16.mxu1 %v1351_v0 }
 0xc09   :  { %v599_v29 = vpop.f32.mrb[4].mxu1 }
 0xc0a   :  { %v604_v30 = vrot.slane %v599_v29, 4  ;;  %v1153_v31 = vpop.f32.mrb[5].mxu1 }
 0xc0c   :  { %v606_v32 = vadd.f32 %v604_v30, %v1432_v17 }
 0xc0e   :  { %1283 = vtanh.f32 %v606_v32 }
 0xc18   :  { %v1284_v33 = vpop.eup %1283 }
 0xc19   :  { %615 = vrot.lane.b32.xlu0 %v1284_v33, %s1354_s1  ;;  %v608_v34 = vmul.f32 0.5, %v1284_v33 }
 0xc1b   :  { %v609_v35 = vadd.f32 0.5, %v608_v34  ;;  %v939_v34 = vld [vmem:[#allocation4 + $0x40] sm:$0xff] }
 0xc1d   :  { %v613_v39 = vmul.f32 %v611_v38, %v609_v35 }
 0xc8b   :  { %v616_v36 = vpop.permute.xlu0 %615 }
 0xc8c   :  { %v618_v37 = vmul.f32 %v616_v36, %v609_v35  ;;  %v941_v36 = vld [vmem:[#allocation4 + $0x50] sm:$0xff] }
 0xc8e   :  { %620 = vrot.lane.b32.xlu1 %v618_v37, %s1354_s1 }
 0xd00   :  { %v621_v40 = vpop.permute.xlu1 %620 }
 0xd01   :  { %v623_v41 = vadd.f32 %v621_v40, %v613_v39 }
 0xd03   :  { %1285 = vtanh.f32 %v623_v41  ;;  %v714_v55 = vrot.slane %v623_v41, 7 }
 0xd0d   :  { %v1286_v42 = vpop.eup %1285 }
 0xd0e   :  { %626 = vrot.lane.b32.xlu0 %v1286_v42, %s1354_s1 }
 0xd80   :  { %v627_v43 = vpop.permute.xlu0 %626 }
 0xd81   :  { %v629_v44 = vmul.f32 %v627_v43, %v609_v35  ;;  %v940_v35 = vld [vmem:[#allocation4 + $0x48] sm:$0xff] }
 0xd82   :  { %v1253_v37 = vpack.c.bf16 %v940_v35, %v939_v34 }
 0xd83   :  { %v631_v45 = vrot.slane %v629_v44, 4  ;;  %v943_v44 = vld [vmem:[#allocation4 + $0x61] sm:$0x1] }
 0xd85   :  { %632 = vrot.lane.b32.xlu1 %v631_v45, %s1355_s6 }
 0xdf7   :  { %v633_v46 = vpop.permute.xlu1 %632 }
 0xdf8   :  { %1163 = vmatmul.mubr.msk.f32.vlgmr.msra.gmra.mrb[6].mxu0 %vm51_vm1, %v633_v46 }
 0xdf9   :  { %1248 = vmatpush3.bf16.msra.mxu0 %v1408_v9  ;;  %1184 = vmatprep.mubr.msk.f32.mxu0 %vm1352_vm0, %v1353_v1 }
 0xdfa   :  { %1249 = vmatprep.subr.bf16.mxu0 %v1351_v0 }
 0xdfd   :  { %1251 = vmatpush3.bf16.msra.mxu0 %v1412_v13 }
 0xecb   :  { %v702_v47 = vpop.f32.mrb[6].mxu0 }
 0xecc   :  { %v707_v48 = vrot.slane %v702_v47, 3  ;;  %v1164_v49 = vpop.f32.mrb[7].mxu0 }
 0xece   :  { %v709_v50 = vadd.f32 %v707_v48, %v1432_v17 }
 0xed0   :  { %1287 = vtanh.f32 %v709_v50 }
 0xeda   :  { %v1288_v51 = vpop.eup %1287 }
 0xedb   :  { %718 = vrot.lane.b32.xlu0 %v1288_v51, %s1354_s1  ;;  %v711_v52 = vmul.f32 0.5, %v1288_v51 }
 0xedd   :  { %v712_v53 = vadd.f32 0.5, %v711_v52 }
 0xedf   :  { %v716_v56 = vmul.f32 %v714_v55, %v712_v53 }
 0xf4d   :  { %v719_v54 = vpop.permute.xlu0 %718 }
 0xf4e   :  { %v721_v9 = vmul.f32 %v719_v54, %v712_v53 }
 0xf50   :  { %723 = vrot.lane.b32.xlu1 %v721_v9, %s1354_s1 }
 0xfc2   :  { %v724_v57 = vpop.permute.xlu1 %723 }
 0xfc3   :  { %v726_v58 = vadd.f32 %v724_v57, %v716_v56 }
 0xfc5   :  { %1289 = vtanh.f32 %v726_v58  ;;  %v817_v11 = vrot.slane %v726_v58, 7 }
 0xfcf   :  { %v1290_v13 = vpop.eup %1289 }
 0xfd0   :  { %729 = vrot.lane.b32.xlu0 %v1290_v13, %s1354_s1 }
0x1042   :  { %v730_v59 = vpop.permute.xlu0 %729 }
0x1043   :  { %v732_v60 = vmul.f32 %v730_v59, %v712_v53 }
0x1045   :  { %v734_v61 = vrot.slane %v732_v60, 5 }
0x1047   :  { %735 = vrot.lane.b32.xlu1 %v734_v61, %s1355_s6 }
0x10b9   :  { %v736_v62 = vpop.permute.xlu1 %735 }
0x10ba   :  { %1174 = vmatmul.mubr.msk.f32.vlgmr.msra.gmra.mrb[6].mxu1 %vm51_vm1, %v736_v62 }
0x10bb   :  { %1195 = vmatprep.mubr.msk.f32.mxu1 %vm1352_vm0, %v1353_v1  ;;  %1254 = vmatpush3.bf16.msra.mxu1 %v1253_v37 }
0x10bc   :  { %1255 = vmatprep.subr.bf16.mxu1 %v1351_v0 }
0x118d   :  { %v805_v63 = vpop.f32.mrb[6].mxu1 }
0x118e   :  { %v810_v2 = vrot.slane %v805_v63, 2  ;;  %v1175_v3 = vpop.f32.mrb[7].mxu1 }
0x1190   :  { %v812_v4 = vadd.f32 %v810_v2, %v1432_v17 }
0x1192   :  { %1291 = vtanh.f32 %v812_v4 }
0x119c   :  { %v1292_v5 = vpop.eup %1291 }
0x119d   :  { %821 = vrot.lane.b32.xlu0 %v1292_v5, %s1354_s1  ;;  %v814_v6 = vmul.f32 0.5, %v1292_v5 }
0x119f   :  { %v815_v7 = vadd.f32 0.5, %v814_v6 }
0x11a1   :  { %v819_v12 = vmul.f32 %v817_v11, %v815_v7 }
0x120f   :  { %v822_v8 = vpop.permute.xlu0 %821 }
0x1210   :  { %v824_v10 = vmul.f32 %v822_v8, %v815_v7 }
0x1212   :  { %826 = vrot.lane.b32.xlu1 %v824_v10, %s1354_s1 }
0x1284   :  { %v827_v14 = vpop.permute.xlu1 %826 }
0x1285   :  { %v829_v15 = vadd.f32 %v827_v14, %v819_v12 }
0x1287   :  { %1293 = vtanh.f32 %v829_v15  ;;  %v920_v30 = vrot.slane %v829_v15, 7 }
0x1291   :  { %v1294_v1 = vpop.eup %1293 }
0x1292   :  { %832 = vrot.lane.b32.xlu0 %v1294_v1, %s1354_s1 }
0x1304   :  { %v833_v16 = vpop.permute.xlu0 %832 }
0x1305   :  { %v835_v18 = vmul.f32 %v833_v16, %v815_v7 }
0x1307   :  { %v837_v19 = vrot.slane %v835_v18, 6 }
0x1309   :  { %838 = vrot.lane.b32.xlu1 %v837_v19, %s1355_s6 }
0x137b   :  { %v839_v20 = vpop.permute.xlu1 %838 }
0x137c   :  { %1185 = vmatmul.mubr.msk.f32.vlgmr.msra.gmra.mrb[8].mxu0 %vm51_vm1, %v839_v20 }
0x144f   :  { %v908_v21 = vpop.f32.mrb[8].mxu0 }
0x1450   :  { %v913_v22 = vrot.slane %v908_v21, 1  ;;  %v1186_v23 = vpop.f32.mrb[9].mxu0 }
0x1452   :  { %v915_v24 = vadd.f32 %v913_v22, %v1432_v17  ;;  %v942_v17 = vld [vmem:[#allocation4 + $0x58] sm:$0xff] }
0x1453   :  { %v1256_v38 = vpack.c.bf16 %v942_v17, %v941_v36 }
0x1454   :  { %1295 = vtanh.f32 %v915_v24 }
0x1455   :  { %1257 = vmatpush3.bf16.msra.mxu1 %v1256_v38 }
0x145e   :  { %v1296_v25 = vpop.eup %1295 }
0x145f   :  { %924 = vrot.lane.b32.xlu0 %v1296_v25, %s1354_s1  ;;  %v917_v26 = vmul.f32 0.5, %v1296_v25 }
0x1461   :  { %v918_v27 = vadd.f32 0.5, %v917_v26 }
0x1463   :  { %v922_v31 = vmul.f32 %v920_v30, %v918_v27 }
0x14d1   :  { %v925_v28 = vpop.permute.xlu0 %924 }
0x14d2   :  { %v927_v29 = vmul.f32 %v925_v28, %v918_v27 }
0x14d4   :  { %929 = vrot.lane.b32.xlu1 %v927_v29, %s1354_s1 }
0x1546   :  { %v930_v32 = vpop.permute.xlu1 %929 }
0x1547   :  { %v932_v33 = vadd.f32 %v930_v32, %v922_v31 }
0x1549   :  { %1297 = vtanh.f32 %v932_v33 }
0x1553   :  { %v1298_v39 = vpop.eup %1297 }
0x1554   :  { %935 = vrot.lane.b32.xlu0 %v1298_v39, %s1354_s1 }
0x15c6   :  { %v936_v40 = vpop.permute.xlu0 %935 }
0x15c7   :  { %v938_v41 = vmul.f32 %v936_v40, %v918_v27 }
0x15c9   :  { %v945_v42 = vrot.slane %v938_v41, 7 }
0x15cb   :  { %946 = vrot.lane.b32.xlu1 %v945_v42, %s1355_s6 }
0x163d   :  { %v947_v43 = vpop.permute.xlu1 %946 }
0x163e   :  { %1196 = vmatmul.mubr.msk.f32.vlgmr.msra.gmra.mrb[8].mxu1 %vm51_vm1, %v947_v43 }
0x1711   :  { %v1016_v45 = vpop.f32.mrb[8].mxu1 }
0x1712   :  { %v1017_v46 = vadd.f32 %v1016_v45, %v943_v44  ;;  %v1197_v47 = vpop.f32.mrb[9].mxu1 }
0x1714   :  { %v1020_v48 = vmax.f32 %v1017_v46, 0.0 }
0x1716   :  { %1021 = vst [vmem:[%s1519_s2] sm:$0x1] %v1020_v48 }
0x1717   :  { %1026 = vsyncpa [#allocation3], 1 }
0x1718   :  { %1027 = vsyncpa [#allocation5], 1 }

</bundles_post_ra>
